<compile_context>
chip_gen: v7x
topology: tpu7x:2x2x1
jax: 0.10.0
libtpu: 0.0.40
codegen_flags: <defaults>
</compile_context>

<pallas_src>
import jax
import jax.numpy as jnp
from jax.experimental import pallas as pl
from jax.experimental.pallas import tpu as pltpu


def _round_up(x, m):
    return (x + m - 1) // m * m


def cbow_logits_kernel(h_ref, w_ref, b_ref, logits_ref, lse_ref, m_sc, l_sc):
    # h_ref: (TB, E) bf16, w_ref: (E, TV) bf16, b_ref: (1, TV) f32
    # logits_ref: (TB, TV) f32, lse_ref: (TB, 1) f32; m_sc/l_sc: (TB, 1) f32 scratch
    v = pl.program_id(1)

    @pl.when(v == 0)
    def _():
        m_sc[...] = jnp.full_like(m_sc, -jnp.inf)
        l_sc[...] = jnp.zeros_like(l_sc)

    # MXU matmul, bf16 inputs, f32 accumulate.
    logits = jnp.dot(h_ref[...], w_ref[...], preferred_element_type=jnp.float32)
    logits = logits + b_ref[...]          # (1, TV) broadcast over TB
    logits_ref[...] = logits              # raw logits for this vocab tile (lane-dense store)

    # Online logsumexp accumulation across vocab tiles.
    m_new = jnp.maximum(m_sc[...], jnp.max(logits, axis=-1, keepdims=True))
    l_sc[...] = (l_sc[...] * jnp.exp(m_sc[...] - m_new)
                 + jnp.sum(jnp.exp(logits - m_new), axis=-1, keepdims=True))
    m_sc[...] = m_new

    @pl.when(v == pl.num_programs(1) - 1)
    def _():
        lse_ref[...] = m_sc[...] + jnp.log(l_sc[...])


def cbow_normalize_kernel(logits_ref, lse_ref, out_ref):
    # out = logits - logsumexp(row)  == log_softmax
    out_ref[...] = logits_ref[...] - lse_ref[...]


def cbow_forward(token_ids, emb_table, w_out, b_out, *, tb=128, tv=512):
    """token_ids: (B, C) int32; emb_table: (V, E) f32; w_out: (E, V) f32; b_out: (V,) f32."""
    B, C = token_ids.shape
    E, V = w_out.shape

    # Glue: embedding gather + context mean outside the kernel (pass only (B, E) hidden).
    # TODO(synk): for very large B, fuse the gather via PrefetchScalarGridSpec + pl.Element rows.
    hidden = jnp.sum(emb_table[token_ids], axis=1) * (1.0 / C)     # (B, E) f32
    hidden = hidden.astype(jnp.bfloat16)
    w_bf16 = w_out.astype(jnp.bfloat16)

    # Tile sizes: batch tile multiple of 8 (>=128 for big B), vocab tile multiple of 128.
    TB = tb if B >= tb else _round_up(B, 8)
    TV = tv if V >= tv else _round_up(V, 128)
    B_pad = _round_up(B, TB)
    V_pad = _round_up(V, TV)

    if B_pad != B:
        hidden = jnp.pad(hidden, ((0, B_pad - B), (0, 0)))
    if V_pad != V:
        w_bf16 = jnp.pad(w_bf16, ((0, 0), (0, V_pad - V)))
        # Very negative bias on padded vocab columns -> exp underflows to 0, lse unaffected.
        b_pad = jnp.pad(b_out, (0, V_pad - V), constant_values=-1e30)
    else:
        b_pad = b_out
    b2d = b_pad.reshape(1, V_pad).astype(jnp.float32)

    grid = (B_pad // TB, V_pad // TV)

    # Pass 1: tiled matmul + bias, raw logits + online logsumexp.
    logits, lse = pl.pallas_call(
        cbow_logits_kernel,
        out_shape=(jax.ShapeDtypeStruct((B_pad, V_pad), jnp.float32),
                   jax.ShapeDtypeStruct((B_pad, 1), jnp.float32)),
        grid_spec=pltpu.PrefetchScalarGridSpec(
            num_scalar_prefetch=0,
            grid=grid,
            in_specs=[
                pl.BlockSpec((TB, E), lambda i, v: (i, 0)),
                pl.BlockSpec((E, TV), lambda i, v: (0, v)),
                pl.BlockSpec((1, TV), lambda i, v: (0, v)),
            ],
            out_specs=[
                pl.BlockSpec((TB, TV), lambda i, v: (i, v)),
                pl.BlockSpec((TB, 1), lambda i, v: (i, 0)),
            ],
            scratch_shapes=[pltpu.VMEM((TB, 1), jnp.float32),
                            pltpu.VMEM((TB, 1), jnp.float32)],
        ),
        compiler_params=pltpu.CompilerParams(
            dimension_semantics=("parallel", "arbitrary"),
            vmem_limit_bytes=32 * 1024 * 1024,
        ),
    )(hidden, w_bf16, b2d)

    # Pass 2: finalize log_softmax = logits - lse (in-place on the logits buffer).
    out_padded = pl.pallas_call(
        cbow_normalize_kernel,
        out_shape=jax.ShapeDtypeStruct((B_pad, V_pad), jnp.float32),
        grid_spec=pltpu.PrefetchScalarGridSpec(
            num_scalar_prefetch=0,
            grid=grid,
            in_specs=[
                pl.BlockSpec((TB, TV), lambda i, v: (i, v)),
                pl.BlockSpec((TB, 1), lambda i, v: (i, 0)),
            ],
            out_specs=pl.BlockSpec((TB, TV), lambda i, v: (i, v)),
        ),
        input_output_aliases={0: 0},
        compiler_params=pltpu.CompilerParams(
            dimension_semantics=("parallel", "parallel"),
            vmem_limit_bytes=32 * 1024 * 1024,
        ),
    )(logits, lse)

    return out_padded[:B, :V]


if __name__ == "__main__":
    vocab_size = 640          # not a multiple of the vocab tile -> exercises padding + online lse
    embedding_dim = 32
    batch = 8
    context = 4

    key = jax.random.PRNGKey(0)
    k_emb, k_w, k_b, k_idx = jax.random.split(key, 4)

    emb_table = jax.random.normal(k_emb, (vocab_size, embedding_dim), dtype=jnp.float32)
    # nn.Linear(embedding_dim, vocab_size).weight is (V, E); store transposed (E, V).
    w_out = (jax.random.normal(k_w, (vocab_size, embedding_dim), dtype=jnp.float32) * 0.1).T
    b_out = jax.random.normal(k_b, (vocab_size,), dtype=jnp.float32) * 0.01

    token_ids = jax.random.randint(k_idx, (batch, context), 0, vocab_size, dtype=jnp.int32)

    fwd = jax.jit(cbow_forward)
    out = fwd(token_ids, emb_table, w_out, b_out)
    out = jax.block_until_ready(out)

    # Reference in plain JAX using the same bf16-rounded operands (f32 accumulate).
    hidden_f32 = emb_table[token_ids].mean(axis=1)
    h_bf = hidden_f32.astype(jnp.bfloat16).astype(jnp.float32)
    w_bf = w_out.astype(jnp.bfloat16).astype(jnp.float32)
    logits_ref = h_bf @ w_bf + b_out
    ref = jax.nn.log_softmax(logits_ref, axis=1)

    assert out.shape == (batch, vocab_size)
    assert jnp.allclose(out, ref, atol=2e-3, rtol=2e-3), float(jnp.max(jnp.abs(out - ref)))
    # Also sanity-check against the pure f32 reference (bf16 matmul error budget).
    ref_f32 = jax.nn.log_softmax(hidden_f32 @ w_out + b_out, axis=1)
    assert jnp.allclose(out, ref_f32, atol=3e-2, rtol=3e-2)

    print("KERNEL_OK")
</pallas_src>

<mosaic_0001>
module attributes {stable_mosaic.version = 11 : i64} {
  func.func @cbow_logits_kernel(%arg0: i32, %arg1: i32, %arg2: memref<8x32xbf16, #tpu.memory_space<vmem>>, %arg3: memref<32x512xbf16, #tpu.memory_space<vmem>>, %arg4: memref<1x512xf32, #tpu.memory_space<vmem>>, %arg5: memref<8x512xf32, #tpu.memory_space<vmem>>, %arg6: memref<8x1xf32, #tpu.memory_space<vmem>>, %arg7: memref<8x1xf32, #tpu.memory_space<vmem>>, %arg8: memref<8x1xf32, #tpu.memory_space<vmem>>) attributes {dimension_semantics = [#tpu.dimension_semantics<parallel>, #tpu.dimension_semantics<arbitrary>], iteration_bounds = array<i64: 1, 2>, scalar_prefetch = 0 : i64, scratch_operands = 2 : i64, tpu.core_type = #tpu.core_type<tc>, window_params = [{transform_indices = @transform_0, window_bounds = array<i64: 8, 32>}, {transform_indices = @transform_1, window_bounds = array<i64: 32, 512>}, {transform_indices = @transform_2, window_bounds = array<i64: 1, 512>}, {transform_indices = @transform_3, window_bounds = array<i64: 8, 512>}, {transform_indices = @transform_4, window_bounds = array<i64: 8, 1>}]} {
    %c0_i32 = arith.constant 0 : i32
    %0 = arith.cmpi eq, %arg1, %c0_i32 : i32
    %1 = arith.extui %0 : i1 to i32
    %c0_i32_0 = arith.constant 0 : i32
    %2 = arith.cmpi ne, %1, %c0_i32_0 : i32
    scf.if %2 {
      %cst_21 = arith.constant 0xFF800000 : f32
      %30 = vector.broadcast %cst_21 : f32 to vector<8x1xf32>
      %c0_22 = arith.constant 0 : index
      %c0_23 = arith.constant 0 : index
      %31 = vector.load %arg7[%c0_22, %c0_23] : memref<8x1xf32, #tpu.memory_space<vmem>>, vector<8x1xf32>
      tpu.vector_store %arg7[%c0_22, %c0_23], %30 {strides = array<i32>} : memref<8x1xf32, #tpu.memory_space<vmem>>, vector<8x1xf32>,
      %cst_24 = arith.constant 0.000000e+00 : f32
      %32 = vector.broadcast %cst_24 : f32 to vector<8x1xf32>
      %c0_25 = arith.constant 0 : index
      %c0_26 = arith.constant 0 : index
      %33 = vector.load %arg8[%c0_25, %c0_26] : memref<8x1xf32, #tpu.memory_space<vmem>>, vector<8x1xf32>
      tpu.vector_store %arg8[%c0_25, %c0_26], %32 {strides = array<i32>} : memref<8x1xf32, #tpu.memory_space<vmem>>, vector<8x1xf32>,
    } else {
    }
    %c0 = arith.constant 0 : index
    %c0_1 = arith.constant 0 : index
    %3 = vector.load %arg2[%c0, %c0_1] : memref<8x32xbf16, #tpu.memory_space<vmem>>, vector<8x32xbf16>
    %c0_2 = arith.constant 0 : index
    %c0_3 = arith.constant 0 : index
    %4 = vector.load %arg3[%c0_2, %c0_3] : memref<32x512xbf16, #tpu.memory_space<vmem>>, vector<32x512xbf16>
    %cst = arith.constant dense<0.000000e+00> : vector<8x512xf32>
    %5 = tpu.matmul %3, %4, %cst {dimension_numbers = #tpu.dot_dimension_numbers<[1], [0], [0], [1], [0, 0, 1, 1], [], []>} : vector<8x32xbf16>, vector<32x512xbf16>, vector<8x512xf32> -> vector<8x512xf32>
    %c0_4 = arith.constant 0 : index
    %c0_5 = arith.constant 0 : index
    %6 = vector.load %arg4[%c0_4, %c0_5] : memref<1x512xf32, #tpu.memory_space<vmem>>, vector<1x512xf32>
    %7 = vector.broadcast %6 : vector<1x512xf32> to vector<8x512xf32>
    %8 = arith.addf %5, %7 : vector<8x512xf32>
    %c0_6 = arith.constant 0 : index
    %c0_7 = arith.constant 0 : index
    %9 = vector.load %arg5[%c0_6, %c0_7] : memref<8x512xf32, #tpu.memory_space<vmem>>, vector<8x512xf32>
    tpu.vector_store %arg5[%c0_6, %c0_7], %8 {strides = array<i32>} : memref<8x512xf32, #tpu.memory_space<vmem>>, vector<8x512xf32>,
    %c0_8 = arith.constant 0 : index
    %c0_9 = arith.constant 0 : index
    %10 = vector.load %arg7[%c0_8, %c0_9] : memref<8x1xf32, #tpu.memory_space<vmem>>, vector<8x1xf32>
    %cst_10 = arith.constant dense<0xFF800000> : vector<8xf32>
    %11 = vector.multi_reduction <maximumf>, %8, %cst_10 [1] : vector<8x512xf32> to vector<8xf32>
    %12 = vector.shape_cast %11 : vector<8xf32> to vector<8x1xf32>
    %13 = arith.maximumf %10, %12 : vector<8x1xf32>
    %c0_11 = arith.constant 0 : index
    %c0_12 = arith.constant 0 : index
    %14 = vector.load %arg8[%c0_11, %c0_12] : memref<8x1xf32, #tpu.memory_space<vmem>>, vector<8x1xf32>
    %c0_13 = arith.constant 0 : index
    %c0_14 = arith.constant 0 : index
    %15 = vector.load %arg7[%c0_13, %c0_14] : memref<8x1xf32, #tpu.memory_space<vmem>>, vector<8x1xf32>
    %16 = arith.subf %15, %13 : vector<8x1xf32>
    %17 = math.exp %16 : vector<8x1xf32>
    %18 = arith.mulf %14, %17 : vector<8x1xf32>
    %19 = vector.broadcast %13 : vector<8x1xf32> to vector<8x512xf32>
    %20 = arith.subf %8, %19 : vector<8x512xf32>
    %21 = math.exp %20 : vector<8x512xf32>
    %cst_15 = arith.constant dense<0.000000e+00> : vector<8xf32>
    %22 = vector.multi_reduction <add>, %21, %cst_15 [1] : vector<8x512xf32> to vector<8xf32>
    %23 = vector.shape_cast %22 : vector<8xf32> to vector<8x1xf32>
    %24 = arith.addf %18, %23 : vector<8x1xf32>
    %c0_16 = arith.constant 0 : index
    %c0_17 = arith.constant 0 : index
    %25 = vector.load %arg8[%c0_16, %c0_17] : memref<8x1xf32, #tpu.memory_space<vmem>>, vector<8x1xf32>
    tpu.vector_store %arg8[%c0_16, %c0_17], %24 {strides = array<i32>} : memref<8x1xf32, #tpu.memory_space<vmem>>, vector<8x1xf32>,
    %c0_18 = arith.constant 0 : index
    %c0_19 = arith.constant 0 : index
    %26 = vector.load %arg7[%c0_18, %c0_19] : memref<8x1xf32, #tpu.memory_space<vmem>>, vector<8x1xf32>
    tpu.vector_store %arg7[%c0_18, %c0_19], %13 {strides = array<i32>} : memref<8x1xf32, #tpu.memory_space<vmem>>, vector<8x1xf32>,
    %c1_i32 = arith.constant 1 : i32
    %27 = arith.cmpi eq, %arg1, %c1_i32 : i32
    %28 = arith.extui %27 : i1 to i32
    %c0_i32_20 = arith.constant 0 : i32
    %29 = arith.cmpi ne, %28, %c0_i32_20 : i32
    scf.if %29 {
      %c0_21 = arith.constant 0 : index
      %c0_22 = arith.constant 0 : index
      %30 = vector.load %arg7[%c0_21, %c0_22] : memref<8x1xf32, #tpu.memory_space<vmem>>, vector<8x1xf32>
      %c0_23 = arith.constant 0 : index
      %c0_24 = arith.constant 0 : index
      %31 = vector.load %arg8[%c0_23, %c0_24] : memref<8x1xf32, #tpu.memory_space<vmem>>, vector<8x1xf32>
      %32 = math.log %31 : vector<8x1xf32>
      %33 = arith.addf %30, %32 : vector<8x1xf32>
      %c0_25 = arith.constant 0 : index
      %c0_26 = arith.constant 0 : index
      %34 = vector.load %arg6[%c0_25, %c0_26] : memref<8x1xf32, #tpu.memory_space<vmem>>, vector<8x1xf32>
      tpu.vector_store %arg6[%c0_25, %c0_26], %33 {strides = array<i32>} : memref<8x1xf32, #tpu.memory_space<vmem>>, vector<8x1xf32>,
    } else {
    }
    return
  }
  func.func @transform_0(%arg0: i32, %arg1: i32) -> (i32, i32) {
    %c0_i32 = arith.constant 0 : i32
    %c0_i32_0 = arith.constant 0 : i32
    return %arg0, %c0_i32 : i32, i32
  }
  func.func @transform_1(%arg0: i32, %arg1: i32) -> (i32, i32) {
    %c0_i32 = arith.constant 0 : i32
    %c0_i32_0 = arith.constant 0 : i32
    return %c0_i32, %arg1 : i32, i32
  }
  func.func @transform_2(%arg0: i32, %arg1: i32) -> (i32, i32) {
    %c0_i32 = arith.constant 0 : i32
    %c0_i32_0 = arith.constant 0 : i32
    return %c0_i32, %arg1 : i32, i32
  }
  func.func @transform_3(%arg0: i32, %arg1: i32) -> (i32, i32) {
    %c0_i32 = arith.constant 0 : i32
    return %arg0, %arg1 : i32, i32
  }
  func.func @transform_4(%arg0: i32, %arg1: i32) -> (i32, i32) {
    %c0_i32 = arith.constant 0 : i32
    %c0_i32_0 = arith.constant 0 : i32
    return %arg0, %c0_i32 : i32, i32
  }
}

module attributes {stable_mosaic.version = 11 : i64} {
  func.func @cbow_normalize_kernel(%arg0: i32, %arg1: i32, %arg2: memref<8x512xf32, #tpu.memory_space<vmem>>, %arg3: memref<8x1xf32, #tpu.memory_space<vmem>>, %arg4: memref<8x512xf32, #tpu.memory_space<vmem>>) attributes {dimension_semantics = [#tpu.dimension_semantics<parallel>, #tpu.dimension_semantics<parallel>], iteration_bounds = array<i64: 1, 2>, scalar_prefetch = 0 : i64, scratch_operands = 0 : i64, tpu.core_type = #tpu.core_type<tc>, window_params = [{transform_indices = @transform_0, window_bounds = array<i64: 8, 512>}, {transform_indices = @transform_1, window_bounds = array<i64: 8, 1>}, {transform_indices = @transform_2, window_bounds = array<i64: 8, 512>}]} {
    %c0 = arith.constant 0 : index
    %c0_0 = arith.constant 0 : index
    %0 = vector.load %arg2[%c0, %c0_0] : memref<8x512xf32, #tpu.memory_space<vmem>>, vector<8x512xf32>
    %c0_1 = arith.constant 0 : index
    %c0_2 = arith.constant 0 : index
    %1 = vector.load %arg3[%c0_1, %c0_2] : memref<8x1xf32, #tpu.memory_space<vmem>>, vector<8x1xf32>
    %2 = vector.broadcast %1 : vector<8x1xf32> to vector<8x512xf32>
    %3 = arith.subf %0, %2 : vector<8x512xf32>
    %c0_3 = arith.constant 0 : index
    %c0_4 = arith.constant 0 : index
    %4 = vector.load %arg4[%c0_3, %c0_4] : memref<8x512xf32, #tpu.memory_space<vmem>>, vector<8x512xf32>
    tpu.vector_store %arg4[%c0_3, %c0_4], %3 {strides = array<i32>} : memref<8x512xf32, #tpu.memory_space<vmem>>, vector<8x512xf32>,
    return
  }
  func.func @transform_0(%arg0: i32, %arg1: i32) -> (i32, i32) {
    %c0_i32 = arith.constant 0 : i32
    return %arg0, %arg1 : i32, i32
  }
  func.func @transform_1(%arg0: i32, %arg1: i32) -> (i32, i32) {
    %c0_i32 = arith.constant 0 : i32
    %c0_i32_0 = arith.constant 0 : i32
    return %arg0, %c0_i32 : i32, i32
  }
  func.func @transform_2(%arg0: i32, %arg1: i32) -> (i32, i32) {
    %c0_i32 = arith.constant 0 : i32
    return %arg0, %arg1 : i32, i32
  }
}

</mosaic_0001>

<bundles_post_ra>
// kernel: cbow_forward.3
= control target key start
LH: loop header
LB: loop body
LE: loop exit
PB: predicated region body
PF: predicated region fallthrough
CT: control target
= control target key end

     0   :  { %s398_s9 = smov 0   ;;  %s400_s10 = smov 0   ;;  %s434_s0 = inlined_call_operand.vmem [shape: f32[8,1024], index: 0, kind: input, shape index: {}, may-alias: {0,2}]   ;;  %s435_s1 = inlined_call_operand.vmem [shape: f32[8,1], index: 1, kind: input, shape index: {}]   ;;  %s436_s2 = inlined_call_operand.vmem [shape: f32[8,1024], index: 2, kind: output, shape index: {}, may-alias: {0,2}]  }
   0x1   :  { %s402_s11 = smov 0  }
   0x2 LB: > { %s21_s12 = sadd.s32 1, %s376_s10  ;;  %p325_p0 = scmp.ge.s32.totalorder %s380_s11, 1  ;;  %s380_s11 = sphi %s402_s11, %s12_s11   ;;  %s376_s10 = sphi %s400_s10, %s438_s10   ;;  %s372_s9 = sphi %s398_s9, %s437_s9  }
   0x3   : > { %p22_p1 = scmp.ge.s32.totalorder %s21_s12, 2  ;;  %p142_p2 = scmp.lt.s32.totalorder %s380_s11, 3 }
   0x5   : > { %s440_s12 = smov (%p22_p1, %s21_s12), 0  ;;  %p143_p3 = pnand %p325_p0, %p142_p2 }
   0x6   : > { %v204_v0 = vld [vmem:[%s435_s1] sm:$0xff] (!%p143_p3)  ;;  %v382_v1 = vmov (!%p143_p3), 0   ;;  %s326_s15 = sshll.u32 (!%p143_p3), %s372_s9, 2 }
   0x7   : > { %146 = sbr.rel (%p143_p3) target bundleno = 140 (0x8c), region = 28  ;;  %357 = vset.pattern.permute.xlu0 (!%p143_p3), %v382_v1  ;;  %p179_p4 = scmp.lt.s32.totalorder (!%p143_p3), %s326_s15, 7 }
   0x8   : > { %207 = vperm.xlu0 (!%p143_p3), %357, %v204_v0  }
   0xe   : > { %s442_s15 = smov (!%p179_p4, %s326_s15), 7 }
   0xf   : > { %s327_s16 = sshll.u32 %s442_s15, 3 }
  0x10   : > { %s184_s19 = scalar_lea.vmem %s434_s0, %s327_s16  ;;  %s198_s22 = scalar_lea.vmem %s436_s2, %s327_s16 }
  0x11   : > { %v200_v2 = vld [vmem:[%s184_s19] sm:$0xff]  ;;  %v201_v3 = vld [vmem:[%s184_s19 + $0x8] sm:$0xff]  ;;  %v202_v5 = vld [vmem:[%s184_s19 + $0x10] sm:$0xff] }
  0x12   : > { %v203_v6 = vld [vmem:[%s184_s19 + $0x18] sm:$0xff] }
  0x87   : > { %v208_v4 = vpop.permute.xlu0 %207 }
  0x88   : > { %v210_v7 = vsub.f32 %v200_v2, %v208_v4  ;;  %v211_v8 = vsub.f32 %v201_v3, %v208_v4  ;;  %v212_v9 = vsub.f32 %v202_v5, %v208_v4  ;;  %v213_v10 = vsub.f32 %v203_v6, %v208_v4 }
  0x8a   : > { %214 = vst [vmem:[%s198_s22] sm:$0xff] %v210_v7  ;;  %215 = vst [vmem:[%s198_s22 + $0x8] sm:$0xff] %v211_v8 }
  0x8b   : > { %216 = vst [vmem:[%s198_s22 + $0x10] sm:$0xff] %v212_v9  ;;  %217 = vst [vmem:[%s198_s22 + $0x18] sm:$0xff] %v213_v10 }
  0x8c PF: > { %s12_s11 = sadd.s32 1, %s380_s11   ;;  %s437_s9 = smov %s376_s10 }
  0x8d   : > { %p9_p5 = scmp.ge.s32.totalorder %s12_s11, 4   ;;  %s438_s10 = smov %s440_s12 }
  0x8f   :  { %11 = sbr.rel (!%p9_p5) target bundleno = 2 (0x2), region = 61 }

// kernel: cbow_forward.2
= control target key start
LH: loop header
LB: loop body
LE: loop exit
PB: predicated region body
PF: predicated region fallthrough
CT: control target
= control target key end

     0   :  { %s824_s15 = smov 0   ;;  %s826_s16 = smov 0   ;;  %s918_s0 = inlined_call_operand.vmem [shape: bf16[8,32], index: 0, kind: input, shape index: {}]   ;;  %s919_s1 = inlined_call_operand.vmem [shape: bf16[32,1024], index: 1, kind: input, shape index: {}]   ;;  %s920_s2 = inlined_call_operand.vmem [shape: f32[1,1024], index: 2, kind: input, shape index: {}]   ;;  %s921_s3 = inlined_call_operand.vmem [shape: f32[8,1024], index: 3, kind: output, shape index: {0}]   ;;  %s922_s4 = inlined_call_operand.vmem [shape: f32[8,1], index: 4, kind: output, shape index: {1}]  }
   0x1   :  { %s828_s17 = smov 0   ;;  %s830_s18 = smov 0  }
   0x2   :  { %s832_s19 = smov 0  }
   0x3 LB: > { %s24_s20 = sadd.s32 1, %s790_s18  ;;  %p67_p1 = scmp.ne.s32.totalorder %s782_s16, %s778_s15  ;;  %s794_s19 = sphi %s832_s19, %s15_s19   ;;  %s790_s18 = sphi %s830_s18, %s926_s18   ;;  %s786_s17 = sphi %s828_s17, %s925_s17   ;;  %s782_s16 = sphi %s826_s16, %s924_s16   ;;  %s778_s15 = sphi %s824_s15, %s923_s15  }
   0x4   : > { %p25_p0 = scmp.ge.s32.totalorder %s24_s20, 2  ;;  %p68_p2 = scmp.eq.s32.totalorder %s794_s19, 0 }
   0x5   : > { %s60_s22 = sadd.s32 1, %s782_s16  ;;  %p663_p5 = scmp.ge.s32.totalorder %s794_s19, 2 }
   0x6   : > { %s928_s20 = smov (%p25_p0, %s24_s20), 0  ;;  %p69_p3 = por %p68_p2, %p67_p1 }
   0x7   : > { %s57_s21 = ssub.s32 %s790_s18, %s928_s20  ;;  %180 = sbr.rel (%p663_p5) target bundleno = 22 (0x16), region = 20 }
   0x8   : > { %p58_p4 = scmp.eq.s32.totalorder %s57_s21, 0 }
   0xa   : > { %s859_s23 = scalar_select %p58_p4, %s782_s16, %s60_s22  }
   0xe   : > { %183 = sbr.rel (!%p69_p3) target bundleno = 22 (0x16), region = 24  ;;  %s185_s24 = sand.u32 (%p69_p3), 1, %s782_s16  }
   0xf   : > { %s687_s25 = sshll.u32 (%p69_p3), %s790_s18, 4  ;;  %s664_s26 = sshll.u32 (%p69_p3), %s185_s24, 6 }
  0x10   : > { %s190_s29 = scalar_lea.vmem (%p69_p3), %s919_s1, %s687_s25  ;;  %s187_s30 = scalar_lea.vmem (%p69_p3), [#allocation4], %s664_s26 }
  0x11   : > { %v203_v0 = vld [vmem:[%s190_s29] sm:$0xff] (%p69_p3)  ;;  %v205_v1 = vld [vmem:[%s190_s29 + $0x8] sm:$0xff] (%p69_p3) }
  0x12   : > { %v207_v2 = vld [vmem:[%s190_s29 + $0x20] sm:$0xff] (%p69_p3)  ;;  %204 = vst [vmem:[%s187_s30] sm:$0xff] (%p69_p3), %v203_v0  ;;  %206 = vst [vmem:[%s187_s30 + $0x8] sm:$0xff] (%p69_p3), %v205_v1  ;;  %v209_v3 = vld [vmem:[%s190_s29 + $0x28] sm:$0xff] (%p69_p3) }
  0x13   : > { %208 = vst [vmem:[%s187_s30 + $0x10] sm:$0xff] (%p69_p3), %v207_v2  ;;  %v211_v4 = vld [vmem:[%s190_s29 + $0x40] sm:$0xff] (%p69_p3)  ;;  %v213_v5 = vld [vmem:[%s190_s29 + $0x48] sm:$0xff] (%p69_p3)  ;;  %210 = vst [vmem:[%s187_s30 + $0x18] sm:$0xff] (%p69_p3), %v209_v3 }
  0x14   : > { %212 = vst [vmem:[%s187_s30 + $0x20] sm:$0xff] (%p69_p3), %v211_v4  ;;  %214 = vst [vmem:[%s187_s30 + $0x28] sm:$0xff] (%p69_p3), %v213_v5  ;;  %v215_v6 = vld [vmem:[%s190_s29 + $0x60] sm:$0xff] (%p69_p3)  ;;  %v217_v7 = vld [vmem:[%s190_s29 + $0x68] sm:$0xff] (%p69_p3) }
  0x15   : > { %216 = vst [vmem:[%s187_s30 + $0x30] sm:$0xff] %v215_v6  ;;  %218 = vst [vmem:[%s187_s30 + $0x38] sm:$0xff] %v217_v7 }
  0x16 PF: > { %p667_p6 = scmp.ge.s32.totalorder %s794_s19, 1  ;;  %p231_p7 = scmp.lt.s32.totalorder %s794_s19, 3 }
  0x18   : > { %p232_p8 = pnand %p667_p6, %p231_p7 }
  0x19   : > { %s238_s5 = sand.u32 (!%p232_p8), 1, %s778_s15   ;;  %s669_s6 = sshll.u32 (!%p232_p8), %s786_s17, 2 }
  0x1a   : > { %235 = sbr.rel (%p232_p8) target bundleno = 732 (0x2dc), region = 51  ;;  %s668_s7 = sshll.u32 (!%p232_p8), %s238_s5, 6 }
  0x1b   : > { %p285_p9 = scmp.lt.s32.totalorder (!%p232_p8), %s669_s6, 7  ;;  %s240_s21 = scalar_lea.vmem (!%p232_p8), [#allocation4], %s668_s7 }
  0x1c   : > { %p672_p10 = scmp.ne.s32.totalorder (!%p232_p8), %s786_s17, 0 }
  0x21   : > { %s930_s6 = smov (!%p285_p9, %s669_s6), 7  ;;  %307 = sbr.rel (%p672_p10) target bundleno = 40 (0x28), region = 59 }
  0x22   : > { %s287_s10 = scalar_lea.vmem %s920_s2, %s930_s6  ;;  %s671_s11 = sshll.u32 %s930_s6, 3  ;;  %vm308_vm0 = vcmask (!%p672_p10), 7168   ;;  %v796_v8 = vmov (!%p672_p10), -inf   ;;  %v797_v9 = vmov (!%p672_p10), 0.0  }
  0x23   : > { %s881_s14 = scalar_lea.vmem %s921_s3, %s671_s11  ;;  %309 = vst.msk [vmem:[#allocation2] sm:$0xff] (!%p672_p10), %vm308_vm0, %v796_v8  ;;  %310 = vst.msk [vmem:[#allocation3] sm:$0xff] (!%p672_p10), %vm308_vm0, %v797_v9 }
  0x28 PF: > { %v732_v10 = vld [vmem:[%s240_s21 + $0x4] ss:$16 sps:$4 sm:$0xff]   ;;  %v734_v11 = vld [vmem:[%s240_s21 + $0xc] ss:$16 sps:$4 sm:$0xff]   ;;  %v798_v12 = vmov 0   ;;  %vm382_vm1 = vcmask 261120   ;;  %v322_v20 = vlaneseq }
  0x29   : > { %418 = vmatprep.mubr.bf16.mxu0 %v798_v12  ;;  %459 = vmatprep.mubr.bf16.mxu1 %v798_v12  ;;  %v736_v13 = vld [vmem:[%s240_s21] ss:$16 sps:$4 sm:$0xff]   ;;  %v737_v14 = vld [vmem:[%s240_s21 + $0x8] ss:$16 sps:$4 sm:$0xff]   ;;  %v738_v15 = vld [vmem:[%s240_s21 + $0x24] ss:$16 sps:$4 sm:$0xff]  }
  0x2a   : > { %386 = vmatprep.subr.bf16.mxu0 %v732_v10  ;;  %731 = vset.pattern.permute.xlu0 %v798_v12  ;;  %v740_v16 = vld [vmem:[%s240_s21 + $0x2c] ss:$16 sps:$4 sm:$0xff]   ;;  %v742_v17 = vld [vmem:[%s240_s21 + $0x20] ss:$16 sps:$4 sm:$0xff]   ;;  %v743_v18 = vld [vmem:[%s240_s21 + $0x28] ss:$16 sps:$4 sm:$0xff]  }
  0x2b   : > { %427 = vmatprep.subr.bf16.mxu1 %v734_v11  ;;  %387 = vmatpush1.bf16.msra.mxu0 %v736_v13  ;;  %v311_v19 = vld [vmem:[%s918_s0] sm:$0xf]  ;;  %v323_v21 = vshrl.u32 %v322_v20, 7  ;;  %vm507_vm2 = vcmask 7168   ;;  %v479_v4 = vld [vmem:[#allocation3] sm:$0xff]  ;;  %p683_p11 = scmp.ne.s32.totalorder %s786_s17, 1 }
  0x2c   : > { %428 = vmatpush1.bf16.msra.mxu1 %v737_v14  ;;  %388 = vmatprep.subr.bf16.mxu0 %v738_v15  ;;  %v320_v24 = vld [vmem:[%s287_s10] sm:$0xf] }
  0x2d   : > { %429 = vmatprep.subr.bf16.mxu1 %v740_v16  ;;  %v324_v22 = vsub.s32 0, %v323_v21  ;;  %v332_v23 = vsub.s32 2, %v323_v21  ;;  %v328_v25 = vsub.s32 1, %v323_v21  ;;  %v336_v26 = vsub.s32 3, %v323_v21  ;;  %v472_v46 = vld [vmem:[#allocation2] sm:$0xff] }
  0x2f   : > { %389 = vmatpush1.bf16.msra.mxu0 %v742_v17  ;;  %v325_v27 = vrot.slane %v320_v24, %v324_v22  ;;  %v333_v28 = vrot.slane %v320_v24, %v332_v23  ;;  %v329_v29 = vrot.slane %v320_v24, %v328_v25  ;;  %v337_v30 = vrot.slane %v320_v24, %v336_v26 }
  0x30   : > { %430 = vmatpush1.bf16.msra.mxu1 %v743_v18 }
  0x32   : > { %681 = vmatmul.mubr.msk.bf16.vlgmr.msra.gmra.mrb[0].mxu0 %vm382_vm1, %v311_v19 }
  0x33   : > { %682 = vmatmul.mubr.msk.bf16.vlgmr.msra.gmra.mrb[0].mxu1 %vm382_vm1, %v311_v19 }
 0x105   : > { %v420_v31 = vpop.f32.mrb[0].mxu0 }
 0x106   : > { %v461_v32 = vpop.f32.mrb[0].mxu1  ;;  %v421_v33 = vadd.f32 %v420_v31, %v325_v27  ;;  %v422_v35 = vpop.f32.mrb[1].mxu0 }
 0x107   : > { %v462_v34 = vadd.f32 %v461_v32, %v333_v28  ;;  %v463_v36 = vpop.f32.mrb[1].mxu1  ;;  %v423_v37 = vadd.f32 %v422_v35, %v329_v29  ;;  %v424_v39 = vpop.f32.mrb[2].mxu0 }
 0x108   : > { %v464_v38 = vadd.f32 %v463_v36, %v337_v30  ;;  %v465_v40 = vpop.f32.mrb[2].mxu1  ;;  %468 = vst [vmem:[%s881_s14] sm:$0xff] %v421_v33  ;;  %v425_v41 = vpop.f32.mrb[3].mxu0 }
 0x109   : > { %v466_v42 = vpop.f32.mrb[3].mxu1  ;;  %469 = vst [vmem:[%s881_s14 + $0x8] sm:$0xff] %v423_v37  ;;  %v473_v43 = vmax.f32 %v421_v33, %v423_v37  ;;  %470 = vst [vmem:[%s881_s14 + $0x10] sm:$0xff] %v462_v34 }
 0x10a   : > { %v474_v44 = vmax.f32 %v462_v34, %v464_v38  ;;  %471 = vst [vmem:[%s881_s14 + $0x18] sm:$0xff] %v464_v38 }
 0x10c   : > { %v475_v45 = vmax.f32 %v473_v43, %v474_v44 }
 0x10e   : > { %476 = vmax.xlane.f32.xlu0 %v475_v45 }
 0x19b   : > { %v477_v47 = vpop.xlane.xlu0 %476 }
 0x19c   : > { %v478_v48 = vmax.f32 %v472_v46, %v477_v47 }
 0x19e   : > { %v480_v49 = vsub.f32 %v472_v46, %v478_v48  ;;  %509 = vst.msk [vmem:[#allocation2] sm:$0xff] %vm507_vm2, %v478_v48  ;;  %486 = vperm.xlu0 %731, %v478_v48  }
 0x1a0   : > { %v481_v2 = vmul.f32 1.442695, %v480_v49 }
 0x1a5   : > { %v514_v10 = vld [vmem:[#allocation2] sm:$0xff] (!%p683_p11) }
 0x21d   : > { %v487_v50 = vpop.permute.xlu0 %486 }
 0x21e   : > { %v489_v51 = vsub.f32 %v421_v33, %v487_v50  ;;  %v490_v52 = vsub.f32 %v423_v37, %v487_v50  ;;  %v491_v53 = vsub.f32 %v462_v34, %v487_v50  ;;  %v492_v54 = vsub.f32 %v464_v38, %v487_v50 }
 0x220   : > { %v493_v55 = vmul.f32 1.442695, %v489_v51  ;;  %v495_v56 = vmul.f32 1.442695, %v490_v52  ;;  %v497_v57 = vmul.f32 1.442695, %v491_v53 }
 0x221   : > { %v499_v58 = vmul.f32 1.442695, %v492_v54 }
 0x222   : > { %744 = vpow2.f32 %v493_v55 }
 0x223   : > { %746 = vpow2.f32 %v495_v56 }
 0x224   : > { %748 = vpow2.f32 %v497_v57 }
 0x225   : > { %750 = vpow2.f32 %v499_v58 }
 0x226   : > { %752 = vpow2.f32 %v481_v2 }
 0x22c   : > { %v745_v59 = vpop.eup %744 }
 0x22d   : > { %v747_v60 = vpop.eup %746 }
 0x22e   : > { %v501_v61 = vadd.f32 %v747_v60, %v745_v59  ;;  %v749_v62 = vpop.eup %748 }
 0x22f   : > { %v751_v0 = vpop.eup %750 }
 0x230   : > { %v502_v63 = vadd.f32 %v749_v62, %v501_v61  ;;  %v753_v3 = vpop.eup %752 }
 0x231   : > { %v483_v5 = vmul.f32 %v753_v3, %v479_v4 }
 0x232   : > { %v503_v1 = vadd.f32 %v751_v0, %v502_v63 }
 0x234   : > { %504 = vadd.xlane.f32.xlu1 %v503_v1 }
 0x2be   : > { %513 = sbr.rel (%p683_p11) target bundleno = 732 (0x2dc), region = 63 }
 0x2c1   : > { %v505_v6 = vpop.xlane.xlu1 %504 }
 0x2c2   : > { %v506_v7 = vadd.f32 %v505_v6, %v483_v5 }
 0x2c4   : > { %508 = vst.msk [vmem:[#allocation3] sm:$0xff] %vm507_vm2, %v506_v7 }
 0x2cb   : > { %v515_v8 = vld [vmem:[#allocation3] sm:$0xff] }
 0x2cc   : > { %754 = vlog2.f32 %v515_v8 }
 0x2d6   : > { %v755_v9 = vpop.eup %754 }
 0x2d7   : > { %v517_v11 = vmul.f32 0.6931472, %v755_v9 }
 0x2d9   : > { %v518_v12 = vadd.f32 %v517_v11, %v514_v10 }
 0x2db   : > { %519 = vst.msk [vmem:[%s922_s4] sm:$0xff] %vm507_vm2, %v518_v12 }
 0x2dc PF: > { %s15_s19 = sadd.s32 1, %s794_s19   ;;  %s923_s15 = smov %s782_s16 }
 0x2dd   : > { %p12_p12 = scmp.ge.s32.totalorder %s15_s19, 4   ;;  %s924_s16 = smov %s859_s23 }
 0x2de   : > { %s925_s17 = smov %s790_s18  ;;  %s926_s18 = smov %s928_s20 }
 0x2df   :  { %14 = sbr.rel (!%p12_p12) target bundleno = 3 (0x3), region = 116 }

</bundles_post_ra>
